<compile_context>
chip_gen: v7x
topology: tpu7x:2x2x1
jax: 0.10.0
libtpu: 0.0.40
codegen_flags: <defaults>
</compile_context>

<pallas_src>
import math
from functools import partial

import jax
import jax.numpy as jnp
from jax.experimental import pallas as pl
from jax.experimental.pallas import tpu as pltpu

EMB_DIM = 32
NUM_HEADS = 4
SEQ = 8
BATCH = 2
EPS = 1e-6

# Set to jnp.bfloat16 at realistic sizes (E>=512) on v6e/v7x for ~2x MXU
# throughput + halved activation/weight bytes; keep f32 on v5e elementwise path.
MXU_DTYPE = jnp.float32


def _mm(a, b):
    """2-D MXU matmul with f32 accumulation; operand dtype controlled by MXU_DTYPE."""
    return jnp.dot(a.astype(MXU_DTYPE), b.astype(MXU_DTYPE),
                   preferred_element_type=jnp.float32)


def transformer_block_kernel(x_ref, wrms_ref, wqkv_ref, bqkv_ref,
                             wo_ref, bo_ref, w1_ref, b1_ref,
                             w2_ref, b2_ref, out_ref, *, num_heads):
    # One grid step == one attention batch: x_ref is the (S, E) slab of batch i.
    S, E = x_ref.shape
    H = num_heads
    D = E // H

    x = x_ref[...].astype(jnp.float32)                                 # (S, E)

    # --- RMSNorm: x * rsqrt(mean(x^2, -1) + eps) * w  (f32 math, VPU/EUP) ---
    ms = jnp.mean(x * x, axis=-1, keepdims=True)
    xn = (x * jax.lax.rsqrt(ms + EPS)) * wrms_ref[...]                  # (S, E)

    # --- fused QKV projection: one (S,E)@(E,3E) MXU matmul.
    # The 1/sqrt(D) scale is already folded into the Q columns wrapper-side.
    qkv = _mm(xn, wqkv_ref[...]) + bqkv_ref[...]                        # (S, 3E)

    # --- head split: H static lane slices per operand, stacked to a leading
    # batch dim (H, S, D). Heads live in D-wide lane ranges, so slices are the
    # layout-safe way to split; no B*H nested loops, no sublane reshapes.
    q = jnp.stack([qkv[:,          h * D:         (h + 1) * D] for h in range(H)], 0)
    k = jnp.stack([qkv[:, E      + h * D: E     + (h + 1) * D] for h in range(H)], 0)
    v = jnp.stack([qkv[:, 2 * E  + h * D: 2 * E + (h + 1) * D] for h in range(H)], 0)

    # --- batched QK^T on the MXU (single leading batch dim = heads) ---
    s = jnp.einsum('hqd,hkd->hqk', q, k,
                   preferred_element_type=jnp.float32)                  # (H, S, S)

    # --- softmax over keys (3-D last-axis reductions, no reshape relayout).
    # EUP approximate reciprocal + one Newton step => exact-softmax parity
    # at ~2 extra VPU ops on a tiny tensor.
    s = s - jnp.max(s, axis=-1, keepdims=True)
    p = jnp.exp(s)
    denom = jnp.sum(p, axis=-1, keepdims=True)
    r = pl.reciprocal(denom, approx=True)
    r = r * (2.0 - denom * r)                                           # Newton step
    p = p * r

    # --- batched PV ---
    o = jnp.einsum('hqk,hkd->hqd', p, v,
                   preferred_element_type=jnp.float32)                  # (H, S, D)

    # --- merge heads with ONE lane-concat, then a single out-projection matmul ---
    o_cat = jnp.concatenate([o[h] for h in range(H)], axis=-1)          # (S, E)
    attn = _mm(o_cat, wo_ref[...]) + bo_ref[...]

    # residual 1
    h1 = x + attn

    # --- feed-forward: Linear(E,4E) -> Linear(4E,E); the PyTorch module has no
    # activation between them.
    # TODO(synk): torch.nn.Dropout is stochastic in train mode; implemented as
    # eval-mode identity.
    ff = _mm(h1, w1_ref[...]) + b1_ref[...]
    ff = _mm(ff, w2_ref[...]) + b2_ref[...]

    # residual 2.  (At toy E=32 this store is a masked sub-128-lane vst; at
    # realistic sizes E is a multiple of 128 and the store is lane-dense.)
    out_ref[...] = (h1 + ff).astype(out_ref.dtype)


def _prep_params(params, num_heads):
    """One-time wrapper-side parameter transform:
    fold the 1/sqrt(head_dim) attention scale into the Q columns of the fused
    QKV weight and bias, so the kernel contains zero scale multiplies."""
    wrms, wqkv_t, bqkv, wo_t, bo, w1_t, b1, w2_t, b2 = params
    E = wo_t.shape[0]
    D = E // num_heads
    scale = 1.0 / math.sqrt(D)
    col_scale = jnp.concatenate(
        [jnp.full((E,), scale, jnp.float32), jnp.ones((2 * E,), jnp.float32)])
    wqkv_s = wqkv_t * col_scale[None, :]
    bqkv_s = bqkv * col_scale[None, :]
    return (wrms, wqkv_s, bqkv_s, wo_t, bo, w1_t, b1, w2_t, b2)


def transformer_block(x_sbe, params):
    """x_sbe: (S, B, E) float32 — same layout/semantics as the PyTorch module."""
    S, B, E = x_sbe.shape
    # Batch-major flattening so each grid step sees one contiguous (S, E) slab.
    x_flat = jnp.transpose(x_sbe, (1, 0, 2)).reshape(B * S, E)          # (B*S, E)

    kparams = _prep_params(params, NUM_HEADS)
    args = (x_flat,) + kparams

    def resident_spec(a):
        # Constant index_map: whole weight/bias stays VMEM-resident across the
        # (parallel) batch grid — never re-DMA'd per step.
        nd = a.ndim
        return pl.BlockSpec(a.shape, lambda i, _nd=nd: (0,) * _nd)

    in_specs = ([pl.BlockSpec((S, E), lambda i: (i, 0))]                # activation: pipelined per batch
                + [resident_spec(a) for a in kparams])

    kernel = partial(transformer_block_kernel, num_heads=NUM_HEADS)

    out_flat = pl.pallas_call(
        kernel,
        out_shape=jax.ShapeDtypeStruct((B * S, E), x_sbe.dtype),
        grid=(B,),                                   # one attention batch per step
        in_specs=in_specs,
        out_specs=pl.BlockSpec((S, E), lambda i: (i, 0)),
        compiler_params=pltpu.CompilerParams(
            dimension_semantics=("parallel",)),      # 2 TCs on v7x each take batches
    )(*args)

    return jnp.transpose(out_flat.reshape(B, S, E), (1, 0, 2))          # back to (S, B, E)


def init_params(key, E):
    """Deterministic synthetic params, PyTorch-convention semantics.
    Linear weights are stored pre-transposed (in, out); the attention scale is
    NOT baked in here (the kernel wrapper folds it in)."""
    H4 = 4 * E
    ks = jax.random.split(key, 8)

    def w(k, shape, fan_in):
        return jax.random.normal(k, shape, jnp.float32) / jnp.sqrt(float(fan_in))

    wrms = jnp.ones((1, E), jnp.float32)            # RMSNorm.weight init = ones
    wqkv_t = w(ks[0], (E, 3 * E), E)                # in_proj_weight.T
    bqkv = w(ks[1], (1, 3 * E), E)                  # in_proj_bias
    wo_t = w(ks[2], (E, E), E)                      # out_proj.weight.T
    bo = w(ks[3], (1, E), E)                        # out_proj.bias
    w1_t = w(ks[4], (E, H4), E)                     # ff Linear1 weight.T
    b1 = w(ks[5], (1, H4), E)
    w2_t = w(ks[6], (H4, E), H4)                    # ff Linear2 weight.T
    b2 = w(ks[7], (1, E), H4)
    return (wrms, wqkv_t, bqkv, wo_t, bo, w1_t, b1, w2_t, b2)


def reference(x_sbe, params):
    """Pure-JAX reference mirroring the PyTorch forward (eval mode)."""
    wrms, wqkv_t, bqkv, wo_t, bo, w1_t, b1, w2_t, b2 = params
    S, B, E = x_sbe.shape
    H, D = NUM_HEADS, E // NUM_HEADS
    x = x_sbe.astype(jnp.float32)
    xn = x * jax.lax.rsqrt(jnp.mean(x * x, -1, keepdims=True) + EPS) * wrms[0]
    qkv = jnp.einsum('sbe,ef->sbf', xn, wqkv_t) + bqkv[0]
    q, k, v = qkv[..., :E], qkv[..., E:2 * E], qkv[..., 2 * E:]

    def split(t):  # (S,B,E) -> (B,H,S,D)
        return jnp.transpose(t.reshape(S, B, H, D), (1, 2, 0, 3))

    qh, kh, vh = split(q), split(k), split(v)
    s = jnp.einsum('bhsd,bhtd->bhst', qh, kh) / math.sqrt(D)
    p = jax.nn.softmax(s, axis=-1)
    o = jnp.einsum('bhst,bhtd->bhsd', p, vh)
    o = jnp.transpose(o, (2, 0, 1, 3)).reshape(S, B, E)
    attn = jnp.einsum('sbe,ef->sbf', o, wo_t) + bo[0]
    h1 = x + attn
    ff = jnp.einsum('sbe,ef->sbf', h1, w1_t) + b1[0]
    ff = jnp.einsum('sbf,fe->sbe', ff, w2_t) + b2[0]
    return h1 + ff


if __name__ == "__main__":
    key = jax.random.PRNGKey(0)
    kx, kp = jax.random.split(key)
    x = jax.random.normal(kx, (SEQ, BATCH, EMB_DIM), jnp.float32)    # (seq, batch, emb)
    params = init_params(kp, EMB_DIM)

    y = transformer_block(x, params)
    jax.block_until_ready(y)

    y_ref = reference(x, params)
    err = float(jnp.max(jnp.abs(y - y_ref)))
    # Newton-corrected EUP reciprocal keeps the softmax at f32 accuracy, so the
    # tolerance can stay tight; structural bugs would show up as O(1) errors.
    assert jnp.allclose(y, y_ref, atol=1e-3, rtol=1e-3), f"max abs err {err}"
    print("KERNEL_OK")
</pallas_src>

<mosaic_0001>
module attributes {stable_mosaic.version = 11 : i64} {
  func.func @transformer_block_kernel(%arg0: i32, %arg1: memref<8x32xf32, #tpu.memory_space<vmem>>, %arg2: memref<1x32xf32, #tpu.memory_space<vmem>>, %arg3: memref<32x96xf32, #tpu.memory_space<vmem>>, %arg4: memref<1x96xf32, #tpu.memory_space<vmem>>, %arg5: memref<32x32xf32, #tpu.memory_space<vmem>>, %arg6: memref<1x32xf32, #tpu.memory_space<vmem>>, %arg7: memref<32x128xf32, #tpu.memory_space<vmem>>, %arg8: memref<1x128xf32, #tpu.memory_space<vmem>>, %arg9: memref<128x32xf32, #tpu.memory_space<vmem>>, %arg10: memref<1x32xf32, #tpu.memory_space<vmem>>, %arg11: memref<8x32xf32, #tpu.memory_space<vmem>>) attributes {dimension_semantics = [#tpu.dimension_semantics<parallel>], iteration_bounds = array<i64: 2>, scalar_prefetch = 0 : i64, scratch_operands = 0 : i64, tpu.core_type = #tpu.core_type<tc>, window_params = [{transform_indices = @transform_0, window_bounds = array<i64: 8, 32>}, {pipeline_mode = #tpu.pipeline_mode<synchronous>, transform_indices = @transform_1, window_bounds = array<i64: 1, 32>}, {pipeline_mode = #tpu.pipeline_mode<synchronous>, transform_indices = @transform_2, window_bounds = array<i64: 32, 96>}, {pipeline_mode = #tpu.pipeline_mode<synchronous>, transform_indices = @transform_3, window_bounds = array<i64: 1, 96>}, {pipeline_mode = #tpu.pipeline_mode<synchronous>, transform_indices = @transform_4, window_bounds = array<i64: 32, 32>}, {pipeline_mode = #tpu.pipeline_mode<synchronous>, transform_indices = @transform_5, window_bounds = array<i64: 1, 32>}, {pipeline_mode = #tpu.pipeline_mode<synchronous>, transform_indices = @transform_6, window_bounds = array<i64: 32, 128>}, {pipeline_mode = #tpu.pipeline_mode<synchronous>, transform_indices = @transform_7, window_bounds = array<i64: 1, 128>}, {pipeline_mode = #tpu.pipeline_mode<synchronous>, transform_indices = @transform_8, window_bounds = array<i64: 128, 32>}, {pipeline_mode = #tpu.pipeline_mode<synchronous>, transform_indices = @transform_9, window_bounds = array<i64: 1, 32>}, {transform_indices = @transform_10, window_bounds = array<i64: 8, 32>}]} {
    %c0 = arith.constant 0 : index
    %c0_0 = arith.constant 0 : index
    %0 = vector.load %arg1[%c0, %c0_0] : memref<8x32xf32, #tpu.memory_space<vmem>>, vector<8x32xf32>
    %1 = arith.mulf %0, %0 : vector<8x32xf32>
    %cst = arith.constant dense<0.000000e+00> : vector<8xf32>
    %2 = vector.multi_reduction <add>, %1, %cst [1] : vector<8x32xf32> to vector<8xf32>
    %3 = vector.shape_cast %2 : vector<8xf32> to vector<8x1xf32>
    %cst_1 = arith.constant 3.200000e+01 : f32
    %4 = vector.broadcast %cst_1 : f32 to vector<8x1xf32>
    %5 = arith.divf %3, %4 : vector<8x1xf32>
    %cst_2 = arith.constant 9.99999997E-7 : f32
    %6 = vector.broadcast %cst_2 : f32 to vector<8x1xf32>
    %7 = arith.addf %5, %6 : vector<8x1xf32>
    %8 = math.rsqrt %7 : vector<8x1xf32>
    %9 = vector.broadcast %8 : vector<8x1xf32> to vector<8x32xf32>
    %10 = arith.mulf %0, %9 : vector<8x32xf32>
    %c0_3 = arith.constant 0 : index
    %c0_4 = arith.constant 0 : index
    %11 = vector.load %arg2[%c0_3, %c0_4] : memref<1x32xf32, #tpu.memory_space<vmem>>, vector<1x32xf32>
    %12 = vector.broadcast %11 : vector<1x32xf32> to vector<8x32xf32>
    %13 = arith.mulf %10, %12 : vector<8x32xf32>
    %c0_5 = arith.constant 0 : index
    %c0_6 = arith.constant 0 : index
    %14 = vector.load %arg3[%c0_5, %c0_6] : memref<32x96xf32, #tpu.memory_space<vmem>>, vector<32x96xf32>
    %cst_7 = arith.constant dense<0.000000e+00> : vector<8x96xf32>
    %15 = tpu.matmul %13, %14, %cst_7 {dimension_numbers = #tpu.dot_dimension_numbers<[1], [0], [0], [1], [0, 0, 1, 1], [], []>} : vector<8x32xf32>, vector<32x96xf32>, vector<8x96xf32> -> vector<8x96xf32>
    %c0_8 = arith.constant 0 : index
    %c0_9 = arith.constant 0 : index
    %16 = vector.load %arg4[%c0_8, %c0_9] : memref<1x96xf32, #tpu.memory_space<vmem>>, vector<1x96xf32>
    %17 = vector.broadcast %16 : vector<1x96xf32> to vector<8x96xf32>
    %18 = arith.addf %15, %17 : vector<8x96xf32>
    %19 = vector.extract_strided_slice %18 {offsets = [0, 0], sizes = [8, 8], strides = [1, 1]} : vector<8x96xf32> to vector<8x8xf32>
    %20 = vector.extract_strided_slice %18 {offsets = [0, 8], sizes = [8, 8], strides = [1, 1]} : vector<8x96xf32> to vector<8x8xf32>
    %21 = vector.extract_strided_slice %18 {offsets = [0, 16], sizes = [8, 8], strides = [1, 1]} : vector<8x96xf32> to vector<8x8xf32>
    %22 = vector.extract_strided_slice %18 {offsets = [0, 24], sizes = [8, 8], strides = [1, 1]} : vector<8x96xf32> to vector<8x8xf32>
    %23 = vector.shape_cast %19 : vector<8x8xf32> to vector<1x8x8xf32>
    %24 = vector.shape_cast %20 : vector<8x8xf32> to vector<1x8x8xf32>
    %25 = vector.shape_cast %21 : vector<8x8xf32> to vector<1x8x8xf32>
    %26 = vector.shape_cast %22 : vector<8x8xf32> to vector<1x8x8xf32>
    %27 = tpu.concatenate %23, %24, %25, %26 in 0 : vector<1x8x8xf32>, vector<1x8x8xf32>, vector<1x8x8xf32>, vector<1x8x8xf32> -> vector<4x8x8xf32>
    %28 = vector.extract_strided_slice %18 {offsets = [0, 32], sizes = [8, 8], strides = [1, 1]} : vector<8x96xf32> to vector<8x8xf32>
    %29 = vector.extract_strided_slice %18 {offsets = [0, 40], sizes = [8, 8], strides = [1, 1]} : vector<8x96xf32> to vector<8x8xf32>
    %30 = vector.extract_strided_slice %18 {offsets = [0, 48], sizes = [8, 8], strides = [1, 1]} : vector<8x96xf32> to vector<8x8xf32>
    %31 = vector.extract_strided_slice %18 {offsets = [0, 56], sizes = [8, 8], strides = [1, 1]} : vector<8x96xf32> to vector<8x8xf32>
    %32 = vector.shape_cast %28 : vector<8x8xf32> to vector<1x8x8xf32>
    %33 = vector.shape_cast %29 : vector<8x8xf32> to vector<1x8x8xf32>
    %34 = vector.shape_cast %30 : vector<8x8xf32> to vector<1x8x8xf32>
    %35 = vector.shape_cast %31 : vector<8x8xf32> to vector<1x8x8xf32>
    %36 = tpu.concatenate %32, %33, %34, %35 in 0 : vector<1x8x8xf32>, vector<1x8x8xf32>, vector<1x8x8xf32>, vector<1x8x8xf32> -> vector<4x8x8xf32>
    %37 = vector.extract_strided_slice %18 {offsets = [0, 64], sizes = [8, 8], strides = [1, 1]} : vector<8x96xf32> to vector<8x8xf32>
    %38 = vector.extract_strided_slice %18 {offsets = [0, 72], sizes = [8, 8], strides = [1, 1]} : vector<8x96xf32> to vector<8x8xf32>
    %39 = vector.extract_strided_slice %18 {offsets = [0, 80], sizes = [8, 8], strides = [1, 1]} : vector<8x96xf32> to vector<8x8xf32>
    %40 = vector.extract_strided_slice %18 {offsets = [0, 88], sizes = [8, 8], strides = [1, 1]} : vector<8x96xf32> to vector<8x8xf32>
    %41 = vector.shape_cast %37 : vector<8x8xf32> to vector<1x8x8xf32>
    %42 = vector.shape_cast %38 : vector<8x8xf32> to vector<1x8x8xf32>
    %43 = vector.shape_cast %39 : vector<8x8xf32> to vector<1x8x8xf32>
    %44 = vector.shape_cast %40 : vector<8x8xf32> to vector<1x8x8xf32>
    %45 = tpu.concatenate %41, %42, %43, %44 in 0 : vector<1x8x8xf32>, vector<1x8x8xf32>, vector<1x8x8xf32>, vector<1x8x8xf32> -> vector<4x8x8xf32>
    "tpu.trace_start"() <{level = 10 : i32, message = "hqd,hkd->hqk"}> : () -> ()
    %cst_10 = arith.constant dense<0.000000e+00> : vector<4x8x8xf32>
    %46 = tpu.matmul %27, %36, %cst_10 {dimension_numbers = #tpu.dot_dimension_numbers<[2], [2], [1], [1], [0, 0, 0, 1, 1, 1], [0], [0]>} : vector<4x8x8xf32>, vector<4x8x8xf32>, vector<4x8x8xf32> -> vector<4x8x8xf32>
    "tpu.trace_stop"() : () -> ()
    %cst_11 = arith.constant dense<0xFF800000> : vector<4x8xf32>
    %47 = vector.multi_reduction <maximumf>, %46, %cst_11 [2] : vector<4x8x8xf32> to vector<4x8xf32>
    %48 = vector.shape_cast %47 : vector<4x8xf32> to vector<4x8x1xf32>
    %49 = vector.broadcast %48 : vector<4x8x1xf32> to vector<4x8x8xf32>
    %50 = arith.subf %46, %49 : vector<4x8x8xf32>
    %51 = math.exp %50 : vector<4x8x8xf32>
    %cst_12 = arith.constant dense<0.000000e+00> : vector<4x8xf32>
    %52 = vector.multi_reduction <add>, %51, %cst_12 [2] : vector<4x8x8xf32> to vector<4x8xf32>
    %53 = vector.shape_cast %52 : vector<4x8xf32> to vector<4x8x1xf32>
    %54 = tpu.reciprocal %53 {approx = true} : vector<4x8x1xf32> -> vector<4x8x1xf32>
    %55 = arith.mulf %53, %54 : vector<4x8x1xf32>
    %cst_13 = arith.constant 2.000000e+00 : f32
    %56 = vector.broadcast %cst_13 : f32 to vector<4x8x1xf32>
    %57 = arith.subf %56, %55 : vector<4x8x1xf32>
    %58 = arith.mulf %54, %57 : vector<4x8x1xf32>
    %59 = vector.broadcast %58 : vector<4x8x1xf32> to vector<4x8x8xf32>
    %60 = arith.mulf %51, %59 : vector<4x8x8xf32>
    "tpu.trace_start"() <{level = 10 : i32, message = "hqk,hkd->hqd"}> : () -> ()
    %cst_14 = arith.constant dense<0.000000e+00> : vector<4x8x8xf32>
    %61 = tpu.matmul %60, %45, %cst_14 {dimension_numbers = #tpu.dot_dimension_numbers<[2], [1], [1], [2], [0, 0, 0, 1, 1, 2], [0], [0]>} : vector<4x8x8xf32>, vector<4x8x8xf32>, vector<4x8x8xf32> -> vector<4x8x8xf32>
    "tpu.trace_stop"() : () -> ()
    %62 = vector.extract_strided_slice %61 {offsets = [0, 0, 0], sizes = [1, 8, 8], strides = [1, 1, 1]} : vector<4x8x8xf32> to vector<1x8x8xf32>
    %63 = vector.shape_cast %62 : vector<1x8x8xf32> to vector<8x8xf32>
    %64 = vector.extract_strided_slice %61 {offsets = [1, 0, 0], sizes = [1, 8, 8], strides = [1, 1, 1]} : vector<4x8x8xf32> to vector<1x8x8xf32>
    %65 = vector.shape_cast %64 : vector<1x8x8xf32> to vector<8x8xf32>
    %66 = vector.extract_strided_slice %61 {offsets = [2, 0, 0], sizes = [1, 8, 8], strides = [1, 1, 1]} : vector<4x8x8xf32> to vector<1x8x8xf32>
    %67 = vector.shape_cast %66 : vector<1x8x8xf32> to vector<8x8xf32>
    %68 = vector.extract_strided_slice %61 {offsets = [3, 0, 0], sizes = [1, 8, 8], strides = [1, 1, 1]} : vector<4x8x8xf32> to vector<1x8x8xf32>
    %69 = vector.shape_cast %68 : vector<1x8x8xf32> to vector<8x8xf32>
    %70 = tpu.concatenate %63, %65, %67, %69 in 1 : vector<8x8xf32>, vector<8x8xf32>, vector<8x8xf32>, vector<8x8xf32> -> vector<8x32xf32>
    %c0_15 = arith.constant 0 : index
    %c0_16 = arith.constant 0 : index
    %71 = vector.load %arg5[%c0_15, %c0_16] : memref<32x32xf32, #tpu.memory_space<vmem>>, vector<32x32xf32>
    %cst_17 = arith.constant dense<0.000000e+00> : vector<8x32xf32>
    %72 = tpu.matmul %70, %71, %cst_17 {dimension_numbers = #tpu.dot_dimension_numbers<[1], [0], [0], [1], [0, 0, 1, 1], [], []>} : vector<8x32xf32>, vector<32x32xf32>, vector<8x32xf32> -> vector<8x32xf32>
    %c0_18 = arith.constant 0 : index
    %c0_19 = arith.constant 0 : index
    %73 = vector.load %arg6[%c0_18, %c0_19] : memref<1x32xf32, #tpu.memory_space<vmem>>, vector<1x32xf32>
    %74 = vector.broadcast %73 : vector<1x32xf32> to vector<8x32xf32>
    %75 = arith.addf %72, %74 : vector<8x32xf32>
    %76 = arith.addf %0, %75 : vector<8x32xf32>
    %c0_20 = arith.constant 0 : index
    %c0_21 = arith.constant 0 : index
    %77 = vector.load %arg7[%c0_20, %c0_21] : memref<32x128xf32, #tpu.memory_space<vmem>>, vector<32x128xf32>
    %cst_22 = arith.constant dense<0.000000e+00> : vector<8x128xf32>
    %78 = tpu.matmul %76, %77, %cst_22 {dimension_numbers = #tpu.dot_dimension_numbers<[1], [0], [0], [1], [0, 0, 1, 1], [], []>} : vector<8x32xf32>, vector<32x128xf32>, vector<8x128xf32> -> vector<8x128xf32>
    %c0_23 = arith.constant 0 : index
    %c0_24 = arith.constant 0 : index
    %79 = vector.load %arg8[%c0_23, %c0_24] : memref<1x128xf32, #tpu.memory_space<vmem>>, vector<1x128xf32>
    %80 = vector.broadcast %79 : vector<1x128xf32> to vector<8x128xf32>
    %81 = arith.addf %78, %80 : vector<8x128xf32>
    %c0_25 = arith.constant 0 : index
    %c0_26 = arith.constant 0 : index
    %82 = vector.load %arg9[%c0_25, %c0_26] : memref<128x32xf32, #tpu.memory_space<vmem>>, vector<128x32xf32>
    %cst_27 = arith.constant dense<0.000000e+00> : vector<8x32xf32>
    %83 = tpu.matmul %81, %82, %cst_27 {dimension_numbers = #tpu.dot_dimension_numbers<[1], [0], [0], [1], [0, 0, 1, 1], [], []>} : vector<8x128xf32>, vector<128x32xf32>, vector<8x32xf32> -> vector<8x32xf32>
    %c0_28 = arith.constant 0 : index
    %c0_29 = arith.constant 0 : index
    %84 = vector.load %arg10[%c0_28, %c0_29] : memref<1x32xf32, #tpu.memory_space<vmem>>, vector<1x32xf32>
    %85 = vector.broadcast %84 : vector<1x32xf32> to vector<8x32xf32>
    %86 = arith.addf %83, %85 : vector<8x32xf32>
    %87 = arith.addf %76, %86 : vector<8x32xf32>
    %c0_30 = arith.constant 0 : index
    %c0_31 = arith.constant 0 : index
    %88 = vector.load %arg11[%c0_30, %c0_31] : memref<8x32xf32, #tpu.memory_space<vmem>>, vector<8x32xf32>
    tpu.vector_store %arg11[%c0_30, %c0_31], %87 {strides = array<i32>} : memref<8x32xf32, #tpu.memory_space<vmem>>, vector<8x32xf32>,
    return
  }
  func.func @transform_0(%arg0: i32) -> (i32, i32) {
    %c0_i32 = arith.constant 0 : i32
    %c0_i32_0 = arith.constant 0 : i32
    return %arg0, %c0_i32 : i32, i32
  }
  func.func @transform_1(%arg0: i32) -> (i32, i32) {
    %c0_i32 = arith.constant 0 : i32
    %c0_i32_0 = arith.constant 0 : i32
    %c0_i32_1 = arith.constant 0 : i32
    return %c0_i32, %c0_i32_0 : i32, i32
  }
  func.func @transform_2(%arg0: i32) -> (i32, i32) {
    %c0_i32 = arith.constant 0 : i32
    %c0_i32_0 = arith.constant 0 : i32
    %c0_i32_1 = arith.constant 0 : i32
    return %c0_i32, %c0_i32_0 : i32, i32
  }
  func.func @transform_3(%arg0: i32) -> (i32, i32) {
    %c0_i32 = arith.constant 0 : i32
    %c0_i32_0 = arith.constant 0 : i32
    %c0_i32_1 = arith.constant 0 : i32
    return %c0_i32, %c0_i32_0 : i32, i32
  }
  func.func @transform_4(%arg0: i32) -> (i32, i32) {
    %c0_i32 = arith.constant 0 : i32
    %c0_i32_0 = arith.constant 0 : i32
    %c0_i32_1 = arith.constant 0 : i32
    return %c0_i32, %c0_i32_0 : i32, i32
  }
  func.func @transform_5(%arg0: i32) -> (i32, i32) {
    %c0_i32 = arith.constant 0 : i32
    %c0_i32_0 = arith.constant 0 : i32
    %c0_i32_1 = arith.constant 0 : i32
    return %c0_i32, %c0_i32_0 : i32, i32
  }
  func.func @transform_6(%arg0: i32) -> (i32, i32) {
    %c0_i32 = arith.constant 0 : i32
    %c0_i32_0 = arith.constant 0 : i32
    %c0_i32_1 = arith.constant 0 : i32
    return %c0_i32, %c0_i32_0 : i32, i32
  }
  func.func @transform_7(%arg0: i32) -> (i32, i32) {
    %c0_i32 = arith.constant 0 : i32
    %c0_i32_0 = arith.constant 0 : i32
    %c0_i32_1 = arith.constant 0 : i32
    return %c0_i32, %c0_i32_0 : i32, i32
  }
  func.func @transform_8(%arg0: i32) -> (i32, i32) {
    %c0_i32 = arith.constant 0 : i32
    %c0_i32_0 = arith.constant 0 : i32
    %c0_i32_1 = arith.constant 0 : i32
    return %c0_i32, %c0_i32_0 : i32, i32
  }
  func.func @transform_9(%arg0: i32) -> (i32, i32) {
    %c0_i32 = arith.constant 0 : i32
    %c0_i32_0 = arith.constant 0 : i32
    %c0_i32_1 = arith.constant 0 : i32
    return %c0_i32, %c0_i32_0 : i32, i32
  }
  func.func @transform_10(%arg0: i32) -> (i32, i32) {
    %c0_i32 = arith.constant 0 : i32
    %c0_i32_0 = arith.constant 0 : i32
    return %arg0, %c0_i32 : i32, i32
  }
}

</mosaic_0001>

<bundles_post_ra>
// kernel: tpu_custom_call.1
= control target key start
LH: loop header
LB: loop body
LE: loop exit
PB: predicated region body
PF: predicated region fallthrough
CT: control target
= control target key end

     0   :  { %15 = vsyncpa [#allocation3], 0  ;;  %s2211_s0 = inlined_call_operand.vmem [shape: f32[16,32], index: 0, kind: input, shape index: {}]   ;;  %s2212_s1 = inlined_call_operand.vmem [shape: f32[1,32], index: 1, kind: input, shape index: {}]   ;;  %s2213_s2 = inlined_call_operand.vmem [shape: f32[32,96], index: 2, kind: input, shape index: {}]   ;;  %s2214_s3 = inlined_call_operand.vmem [shape: f32[1,96], index: 3, kind: input, shape index: {}]   ;;  %s2215_s4 = inlined_call_operand.vmem [shape: f32[32,32], index: 4, kind: input, shape index: {}]   ;;  %s2216_s5 = inlined_call_operand.vmem [shape: f32[1,32], index: 5, kind: input, shape index: {}]   ;;  %s2217_s6 = inlined_call_operand.vmem [shape: f32[32,128], index: 6, kind: input, shape index: {}]   ;;  %s2218_s7 = inlined_call_operand.vmem [shape: f32[1,128], index: 7, kind: input, shape index: {}]   ;;  %s2219_s8 = inlined_call_operand.vmem [shape: f32[128,32], index: 8, kind: input, shape index: {}]   ;;  %s2220_s9 = inlined_call_operand.vmem [shape: f32[1,32], index: 9, kind: input, shape index: {}]   ;;  %s2221_s10 = inlined_call_operand.hbm [shape: f32[16,32], index: 10, kind: output, shape index: {}]  }
   0x1   :  { %17 = vsyncpa [#allocation3 + $0x1], 0  ;;  %s1911_s13 = smov 0   ;;  %s1913_s14 = smov 0  }
   0x2   :  { %s1915_s15 = smov 0   ;;  %s1917_s16 = smov 0  }
   0x3 LB: > { %s1932_s17 = sadd.s32 4294967295, %s1842_s16   ;;  %s1484_s18 = sadd.s32 4294967294, %s1842_s16   ;;  %s1842_s16 = sphi %s1917_s16, %s2227_s16   ;;  %s1838_s15 = sphi %s1915_s15, %s2226_s15   ;;  %s1834_s14 = sphi %s1913_s14, %s2225_s14   ;;  %s1830_s13 = sphi %s1911_s13, %s2224_s13  }
   0x4   : > { %s1936_s19 = sadd.s32 1, %s1842_s16   ;;  %s245_s20 = sadd.s32 1, %s1838_s15 }
   0x5   : > { %s242_s21 = ssub.s32 %s1842_s16, %s1936_s19  ;;  %p255_p0 = scmp.ne.s32.totalorder %s1838_s15, %s1834_s14 }
   0x6   : > { %p243_p1 = scmp.eq.s32.totalorder %s242_s21, 0  ;;  %p256_p2 = scmp.eq.s32.totalorder %s1932_s17, 1 }
   0x7   : > { %p261_p3 = scmp.ne.s32.totalorder %s1834_s14, %s1830_s13  ;;  %p262_p4 = scmp.eq.s32.totalorder %s1484_s18, 1 }
   0x8   : > { %s1947_s22 = scalar_select %p243_p1, %s1838_s15, %s245_s20  }
   0x9   : > { %p1949_p5 = por %p256_p2, %p255_p0  ;;  %p1953_p6 = por %p262_p4, %p261_p3 }
   0xa   : > { %p1487_p7 = scmp.ge.s32.totalorder %s1842_s16, 1  ;;  %p314_p8 = scmp.lt.s32.totalorder %s1842_s16, 3 }
   0xc   : > { %p315_p9 = pnand %p1487_p7, %p314_p8 }
   0xd   : > { %p351_p10 = scmp.lt.s32.totalorder (!%p315_p9), %s1932_s17, 1  ;;  %vm357_vm0 = vcmask (!%p315_p9), 261120   ;;  %v374_v3 = vld [vmem:[%s2213_s2] sm:$0xff] (!%p315_p9)  ;;  %v375_v4 = vld [vmem:[%s2213_s2 + $0x8] sm:$0xff] (!%p315_p9)  ;;  %v376_v5 = vld [vmem:[%s2213_s2 + $0x10] sm:$0xff] (!%p315_p9)  ;;  %v1844_v6 = vmov (!%p315_p9), 0.0|0.0  }
   0xe   : > { %318 = sbr.rel (%p315_p9) target bundleno = 2210 (0x8a2), region = 60  ;;  %1670 = vmatprep.subr.bf16.mxu1 (!%p315_p9), %v1844_v6  ;;  %v1671_v7 = vpack.c.bf16 (!%p315_p9), %v375_v4, %v374_v3  ;;  %v377_v8 = vld [vmem:[%s2213_s2 + $0x18] sm:$0xff] (!%p315_p9)  ;;  %vm1845_vm1 = vmmov (!%p315_p9), 0   ;;  %v1846_v9 = vmov (!%p315_p9), 0.0   ;;  %v1490_v15 = vld [vmem:[%s2212_s1] ss:$0 sm:$0xff] (!%p315_p9) }
   0xf   : > { %1570 = vmatprep.mubr.msk.f32.mxu1 (!%p315_p9), %vm1845_vm1, %v1846_v9  ;;  %1583 = vmatprep.subr.mxu0 (!%p315_p9), %v1846_v9  ;;  %v1674_v10 = vpack.c.bf16 (!%p315_p9), %v377_v8, %v376_v5  ;;  %v1491_v18 = vld [vmem:[%s2214_s3] ss:$0 sm:$0xff] (!%p315_p9)  ;;  %s1847_s11 = smov (!%p315_p9), 112   ;;  %s1848_s12 = smov (!%p315_p9), 120   ;;  %vm467_vm2 = vcmask (!%p315_p9), 64512   ;;  %vm1143_vm3 = vcmask (!%p315_p9), 130048  }
  0x10   : > { %1585 = vmatprep.mubr.msk.f32.mxu0 (!%p315_p9), %vm1845_vm1, %v1846_v9  ;;  %1672 = vmatpush3.bf16.msra.mxu1 (!%p315_p9), %v1671_v7  ;;  %s1849_s18 = smov (!%p315_p9), 104   ;;  %s1850_s20 = smov (!%p315_p9), 96   ;;  %vm1145_vm4 = vcmask (!%p315_p9), 195584  }
  0x11   : > { %1673 = vmatprep.subr.bf16.mxu1 (!%p315_p9), %v1844_v6  ;;  %s1851_s21 = smov (!%p315_p9), 64  }
  0x14   : > { %1675 = vmatpush3.bf16.msra.mxu1 (!%p315_p9), %v1674_v10 }
  0x15   : > { %s352_s25 = scalar_select %p351_p10, %s1932_s17, 1  ;;  %1573 = vmatprep.subr.mxu1 %v1846_v9 }
  0x17   : > { %s1489_s26 = sshll.u32 %s352_s25, 3  ;;  %s1852_s25 = smov 8  }
  0x18   : > { %s354_s29 = scalar_lea.vmem %s2211_s0, %s1489_s26 }
  0x19   : > { %v1964_v0 = vld [vmem:[%s354_s29] sm:$0xff]  ;;  %s1511_s29 = sshll.u32 %s1932_s17, 7  ;;  %s1855_s17 = smov [#allocation2]  }
  0x1a   : > { %v356_v1 = vmul.f32 %v1964_v0, %v1964_v0 }
  0x1c   : > { %v358_v2 = vsel %vm357_vm0, %v356_v1, 0.0 }
  0x1d   : > { %359 = vadd.xlane.f32.xlu0 %v358_v2 }
  0xaa   : > { %v360_v11 = vpop.xlane.xlu0 %359 }
  0xab   : > { %v362_v12 = vmul.f32 0.03125, %v360_v11 }
  0xad   : > { %v363_v13 = vadd.f32 1e-06, %v362_v12 }
  0xaf   : > { %1762 = vrsqrt.f32 %v363_v13 }
  0xb9   : > { %v1763_v14 = vpop.eup %1762 }
  0xba   : > { %v365_v16 = vmul.f32 %v1763_v14, %v1964_v0 }
  0xbc   : > { %v373_v17 = vmul.f32 %v1490_v15, %v365_v16 }
  0xbe   : > { %1571 = vmatmul.mubr.msk.f32.vlgmr.msra.gmra.mrb[0].mxu1 %vm357_vm0, %v373_v17 }
  0xbf   : > { %1575 = vmatprep.mubr.msk.f32.mxu1 %vm1845_vm1, %v1846_v9 }
 0x191   : > { %v454_v19 = vpop.f32.mrb[0].mxu1 }
 0x192   : > { %v1999_v20 = vadd.f32 %v1491_v18, %v454_v19  ;;  %v1572_v21 = vpop.f32.mrb[1].mxu1 }
 0x194   : > { %461 = vrot.lane.b32.xlu1 %v1999_v20, %s1847_s11  ;;  %459 = vrot.lane.b32.xlu0 %v1999_v20, %s1848_s12 }
 0x198   : > { %463 = vrot.lane.b32.xlu1 %v1999_v20, %s1849_s18 }
 0x19c   : > { %465 = vrot.lane.b32.xlu1 %v1999_v20, %s1850_s20 }
 0x206   : > { %v2005_v22 = vpop.permute.xlu1 %461  ;;  %v2007_v23 = vpop.permute.xlu0 %459 }
 0x207   : > { %542 = vrot.lane.b32.xlu1 %v2007_v23, %s1850_s20 }
 0x20a   : > { %v2010_v24 = vpop.permute.xlu1 %463 }
 0x20b   : > { %618 = vrot.lane.b32.xlu1 %v2005_v22, %s1850_s20 }
 0x20e   : > { %v466_v25 = vpop.permute.xlu1 %465 }
 0x20f   : > { %1574 = vmatpush3.xpose.msk.msra.mxu1 %vm467_vm2, %v466_v25  ;;  %694 = vrot.lane.b32.xlu1 %v2010_v24, %s1850_s20  ;;  %s1853_s20 = smov 16  }
 0x210   : > { %1578 = vmatprep.subr.mxu1 %v1846_v9 }
 0x212   : > { %1576 = vmatmul.mubr.msk.f32.vlgmr.msra.gmra.mrb[2].mxu1 %vm467_vm2, %v1999_v20 }
 0x213   : > { %1580 = vmatprep.mubr.msk.f32.mxu1 %vm1845_vm1, %v1846_v9 }
 0x279   : > { %v543_v26 = vpop.permute.xlu1 %542 }
 0x27a   : > { %1579 = vmatpush3.xpose.msk.msra.mxu1 %vm467_vm2, %v543_v26 }
 0x27b   : > { %1588 = vmatprep.subr.mxu1 %v1846_v9 }
 0x27d   : > { %1581 = vmatmul.mubr.msk.f32.vlgmr.msra.gmra.mrb[4].mxu1 %vm467_vm2, %v2007_v23  ;;  %v619_v27 = vpop.permute.xlu1 %618 }
 0x27e   : > { %1584 = vmatpush3.xpose.msk.msra.mxu0 %vm467_vm2, %v619_v27  ;;  %1590 = vmatprep.mubr.msk.f32.mxu1 %vm1845_vm1, %v1846_v9 }
 0x27f   : > { %1593 = vmatprep.subr.mxu0 %v1846_v9 }
 0x281   : > { %1586 = vmatmul.mubr.msk.f32.vlgmr.msra.gmra.mrb[0].mxu0 %vm467_vm2, %v2005_v22  ;;  %v695_v28 = vpop.permute.xlu1 %694 }
 0x282   : > { %1589 = vmatpush3.xpose.msk.msra.mxu1 %vm467_vm2, %v695_v28  ;;  %1595 = vmatprep.mubr.msk.f32.mxu0 %vm1845_vm1, %v1846_v9 }
 0x283   : > { %1598 = vmatprep.subr.mxu1 %v1846_v9 }
 0x285   : > { %1591 = vmatmul.mubr.msk.f32.vlgmr.msra.gmra.mrb[6].mxu1 %vm467_vm2, %v2010_v24 }
 0x286   : > { %1600 = vmatprep.mubr.msk.f32.mxu1 %vm1845_vm1, %v1846_v9 }
 0x2e5   : > { %v538_v29 = vpop.f32.mrb[2].mxu1 }
 0x2e6   : > { %v1577_v30 = vpop.f32.mrb[3].mxu1  ;;  %v770_v31 = vsel %vm467_vm2, %v538_v29, -inf }
 0x2e7   : > { %771 = vmax.xlane.f32.xlu1 %v770_v31 }
 0x350   : > { %v614_v32 = vpop.f32.mrb[4].mxu1 }
 0x351   : > { %v1582_v33 = vpop.f32.mrb[5].mxu1  ;;  %v773_v34 = vsel %vm467_vm2, %v614_v32, -inf }
 0x352   : > { %774 = vmax.xlane.f32.xlu0 %v773_v34  ;;  %v1148_v33 = vld [vmem:[%s2215_s4 + $0x8] sm:$0xff]  ;;  %v1149_v34 = vld [vmem:[%s2215_s4 + $0x10] sm:$0xff] }
 0x354   : > { %v690_v35 = vpop.f32.mrb[0].mxu0 }
 0x355   : > { %v1587_v36 = vpop.f32.mrb[1].mxu0  ;;  %v776_v37 = vsel %vm467_vm2, %v690_v35, -inf }
 0x356   : > { %777 = vmax.xlane.f32.xlu0 %v776_v37  ;;  %v1150_v36 = vld [vmem:[%s2215_s4 + $0x18] sm:$0xff] }
 0x357   : > { %v1680_v37 = vpack.c.bf16 %v1150_v36, %v1149_v34 }
 0x358   : > { %v766_v38 = vpop.f32.mrb[6].mxu1 }
 0x359   : > { %v1592_v39 = vpop.f32.mrb[7].mxu1  ;;  %v779_v40 = vsel %vm467_vm2, %v766_v38, -inf }
 0x35a   : > { %780 = vmax.xlane.f32.xlu1 %v779_v40 }
 0x374   : > { %v772_v41 = vpop.xlane.xlu1 %771 }
 0x375   : > { %v782_v42 = vsub.f32 %v538_v29, %v772_v41 }
 0x377   : > { %v786_v43 = vmul.f32 1.442695, %v782_v42 }
 0x379   : > { %1764 = vpow2.f32 %v786_v43  ;;  %v1232_v43 = vld [vmem:[%s2217_s6] sm:$0xff] }
 0x383   : > { %v1765_v44 = vpop.eup %1764 }
 0x384   : > { %v794_v45 = vsel %vm467_vm2, %v1765_v44, 0.0 }
 0x385   : > { %795 = vadd.xlane.f32.xlu0 %v794_v45 }
 0x3df   : > { %v775_v46 = vpop.xlane.xlu0 %774 }
 0x3e0   : > { %v783_v47 = vsub.f32 %v614_v32, %v775_v46  ;;  %v1147_v32 = vld [vmem:[%s2215_s4] sm:$0xff] }
 0x3e2   : > { %v788_v48 = vmul.f32 1.442695, %v783_v47 }
 0x3e3   : > { %v778_v49 = vpop.xlane.xlu0 %777 }
 0x3e4   : > { %1766 = vpow2.f32 %v788_v48  ;;  %v784_v50 = vsub.f32 %v690_v35, %v778_v49  ;;  %v1677_v35 = vpack.c.bf16 %v1148_v33, %v1147_v32 }
 0x3e6   : > { %v790_v51 = vmul.f32 1.442695, %v784_v50 }
 0x3e7   : > { %v781_v56 = vpop.xlane.xlu1 %780 }
 0x3e8   : > { %1768 = vpow2.f32 %v790_v51  ;;  %v785_v57 = vsub.f32 %v766_v38, %v781_v56  ;;  %v1234_v51 = vld [vmem:[%s2217_s6 + $0x10] sm:$0xff] }
 0x3ea   : > { %v792_v58 = vmul.f32 1.442695, %v785_v57  ;;  %v1319_v57 = vld [vmem:[%s2219_s8 + $0x18] sm:$0xff] }
 0x3ec   : > { %1770 = vpow2.f32 %v792_v58 }
 0x3ee   : > { %v1767_v52 = vpop.eup %1766 }
 0x3ef   : > { %v797_v53 = vsel %vm467_vm2, %v1767_v52, 0.0 }
 0x3f0   : > { %798 = vadd.xlane.f32.xlu1 %v797_v53 }
 0x3f2   : > { %v1769_v54 = vpop.eup %1768 }
 0x3f3   : > { %v800_v55 = vsel %vm467_vm2, %v1769_v54, 0.0 }
 0x3f4   : > { %801 = vadd.xlane.f32.xlu0 %v800_v55  ;;  %v1318_v55 = vld [vmem:[%s2219_s8 + $0x10] sm:$0xff] }
 0x3f5   : > { %v1692_v58 = vpack.c.bf16 %v1319_v57, %v1318_v55 }
 0x3f6   : > { %v1771_v59 = vpop.eup %1770 }
 0x3f7   : > { %v803_v60 = vsel %vm467_vm2, %v1771_v59, 0.0 }
 0x401   : > { %902 = vrot.lane.b32.xlu1 %v2007_v23, %s1851_s21 }
 0x40a   : > { %826 = vrot.lane.b32.xlu0 %v1999_v20, %s1851_s21 }
 0x40e   : > { %1054 = vrot.lane.b32.xlu0 %v2010_v24, %s1851_s21 }
 0x412   : > { %v796_v61 = vpop.xlane.xlu0 %795 }
 0x413   : > { %1772 = vrcp.f32 %v796_v61 }
 0x41d   : > { %v1773_v62 = vpop.eup %1772 }
 0x41e   : > { %v810_v63 = vmul.f32 %v1773_v62, %v796_v61 }
 0x420   : > { %v814_v1 = vsub.f32 2.0, %v810_v63  ;;  %v1323_v63 = vld [vmem:[%s2219_s8 + $0x38] sm:$0xff] }
 0x422   : > { %v818_v3 = vmul.f32 %v1773_v62, %v814_v1  ;;  %v1322_v62 = vld [vmem:[%s2219_s8 + $0x30] sm:$0xff] }
 0x423   : > { %v1698_v1 = vpack.c.bf16 %v1323_v63, %v1322_v62 }
 0x424   : > { %v822_v7 = vmul.f32 %v1765_v44, %v818_v3  ;;  %v1233_v44 = vld [vmem:[%s2217_s6 + $0x8] sm:$0xff] }
 0x425   : > { %804 = vadd.xlane.f32.xlu1 %v803_v60  ;;  %v1683_v47 = vpack.c.bf16 %v1233_v44, %v1232_v43  ;;  %v1321_v60 = vld [vmem:[%s2219_s8 + $0x28] sm:$0xff] }
 0x426   : > { %v1325_v3 = vld [vmem:[%s2219_s8 + $0x48] sm:$0xff] }
 0x436   : > { %978 = vrot.lane.b32.xlu1 %v2005_v22, %s1851_s21  ;;  %s1854_s21 = smov 24  }
 0x47d   : > { %v799_v2 = vpop.xlane.xlu1 %798 }
 0x47e   : > { %1774 = vrcp.f32 %v799_v2 }
 0x481   : > { %v802_v4 = vpop.xlane.xlu0 %801  ;;  %v903_v5 = vpop.permute.xlu1 %902 }
 0x482   : > { %1599 = vmatpush3.msra.mxu1 %v903_v5  ;;  %1776 = vrcp.f32 %v802_v4  ;;  %v1326_v5 = vld [vmem:[%s2219_s8 + $0x50] sm:$0xff] }
 0x483   : > { %1608 = vmatprep.subr.mxu1 %v1846_v9 }
 0x485   : > { %v827_v8 = vpop.permute.xlu0 %826 }
 0x486   : > { %1594 = vmatpush3.msra.mxu0 %v827_v8 }
 0x487   : > { %1596 = vmatmul.mubr.msk.f32.vlgmr.msra.gmra.mrb[2].mxu0 %vm467_vm2, %v822_v7  ;;  %1603 = vmatprep.subr.mxu0 %v1846_v9  ;;  %v1327_v7 = vld [vmem:[%s2219_s8 + $0x58] sm:$0xff] }
 0x488   : > { %v1775_v10 = vpop.eup %1774  ;;  %1605 = vmatprep.mubr.msk.f32.mxu0 %vm1845_vm1, %v1846_v9  ;;  %v1704_v8 = vpack.c.bf16 %v1327_v7, %v1326_v5 }
 0x489   : > { %v811_v11 = vmul.f32 %v1775_v10, %v799_v2  ;;  %v1055_v15 = vpop.permute.xlu0 %1054  ;;  %v1324_v2 = vld [vmem:[%s2219_s8 + $0x40] sm:$0xff] }
 0x48b   : > { %v815_v12 = vsub.f32 2.0, %v811_v11  ;;  %v1329_v11 = vld [vmem:[%s2219_s8 + $0x68] sm:$0xff] }
 0x48c   : > { %v1777_v16 = vpop.eup %1776 }
 0x48d   : > { %v819_v13 = vmul.f32 %v1775_v10, %v815_v12  ;;  %v812_v17 = vmul.f32 %v1777_v16, %v802_v4  ;;  %v1701_v4 = vpack.c.bf16 %v1325_v3, %v1324_v2  ;;  %v1328_v10 = vld [vmem:[%s2219_s8 + $0x60] sm:$0xff] }
 0x48e   : > { %v1707_v12 = vpack.c.bf16 %v1329_v11, %v1328_v10 }
 0x48f   : > { %v823_v14 = vmul.f32 %v1767_v52, %v819_v13  ;;  %v816_v18 = vsub.f32 2.0, %v812_v17  ;;  %v1235_v52 = vld [vmem:[%s2217_s6 + $0x18] sm:$0xff]  ;;  %v1505_v13 = vld [vmem:[%s2216_s5] ss:$0 sm:$0xff] }
 0x490   : > { %v1686_v53 = vpack.c.bf16 %v1235_v52, %v1234_v51 }
 0x491   : > { %1601 = vmatmul.mubr.msk.f32.vlgmr.msra.gmra.mrb[8].mxu1 %vm467_vm2, %v823_v14  ;;  %v820_v19 = vmul.f32 %v1777_v16, %v816_v18  ;;  %v1330_v18 = vld [vmem:[%s2219_s8 + $0x70] sm:$0xff] }
 0x492   : > { %1609 = vmatpush3.msra.mxu1 %v1055_v15  ;;  %1610 = vmatprep.mubr.msk.f32.mxu1 %vm1845_vm1, %v1846_v9 }
 0x493   : > { %1676 = vmatprep.subr.bf16.mxu1 %v1844_v6  ;;  %v824_v21 = vmul.f32 %v1769_v54, %v820_v19  ;;  %v1316_v54 = vld [vmem:[%s2219_s8] sm:$0xff] }
 0x4b2   : > { %v805_v20 = vpop.xlane.xlu1 %804 }
 0x4b3   : > { %1778 = vrcp.f32 %v805_v20 }
 0x4b6   : > { %v979_v22 = vpop.permute.xlu1 %978 }
 0x4b7   : > { %1604 = vmatpush3.msra.mxu0 %v979_v22 }
 0x4b8   : > { %1606 = vmatmul.mubr.msk.f32.vlgmr.msra.gmra.mrb[4].mxu0 %vm467_vm2, %v824_v21  ;;  %1688 = vmatprep.subr.bf16.mxu0 %v1844_v6 }
 0x4b9   : > { %1667 = vmatprep.mubr.msk.f32.mxu0 %vm1845_vm1, %v1846_v9 }
 0x4bd   : > { %v1779_v23 = vpop.eup %1778 }
 0x4be   : > { %v813_v24 = vmul.f32 %v1779_v23, %v805_v20  ;;  %v1507_v20 = vld [vmem:[%s2218_s7] ss:$0 sm:$0xff] }
 0x4c0   : > { %v817_v25 = vsub.f32 2.0, %v813_v24 }
 0x4c2   : > { %v821_v26 = vmul.f32 %v1779_v23, %v817_v25 }
 0x4c4   : > { %v825_v27 = vmul.f32 %v1771_v59, %v821_v26  ;;  %v1320_v59 = vld [vmem:[%s2219_s8 + $0x20] sm:$0xff] }
 0x4c5   : > { %v1695_v61 = vpack.c.bf16 %v1321_v60, %v1320_v59 }
 0x4c6   : > { %1611 = vmatmul.mubr.msk.f32.vlgmr.msra.gmra.mrb[10].mxu1 %vm467_vm2, %v825_v27 }
 0x4c7   : > { %1621 = vmatprep.mubr.msk.f32.mxu1 %vm1845_vm1, %v1846_v9  ;;  %1678 = vmatpush3.bf16.msra.mxu1 %v1677_v35 }
 0x4c8   : > { %1679 = vmatprep.subr.bf16.mxu1 %v1844_v6 }
 0x4cb   : > { %1681 = vmatpush3.bf16.msra.mxu1 %v1680_v37 }
 0x4cc   : > { %1682 = vmatprep.subr.bf16.mxu1 %v1844_v6 }
 0x55a   : > { %v898_v28 = vpop.f32.mrb[2].mxu0 }
 0x55b   : > { %v1597_v29 = vpop.f32.mrb[3].mxu0 }
 0x564   : > { %v974_v30 = vpop.f32.mrb[8].mxu1 }
 0x565   : > { %1131 = vrot.lane.b32.xlu1 %v974_v30, %s1852_s25  ;;  %v1602_v31 = vpop.f32.mrb[9].mxu1  ;;  %s348_s25 = sand.u32 1, %s1834_s14  }
 0x566   : > { %s1488_s26 = sshll.u32 %s348_s25, 3 }
 0x567   : > { %s350_s30 = scalar_lea.vmem [#allocation2], %s1488_s26  ;;  %s1784_s26 = sshll.u32 %s1855_s17, 4  ;;  %s1785_s26 = int_to_ptr.vmem [resolvable:$false] %s1784_s26 }
 0x568   : > { %s1425_s11 = sshll.u32 %s350_s30, 4  ;;  %s1786_s28 = scalar_lea.vmem %s1785_s26, 256  ;;  %s2170_s11 = int_to_ptr.vmem [resolvable:$true] %s1425_s11 }
 0x569   : > { %s1780_s27 = scalar_lea.vmem %s2170_s11, 128  ;;  %p1787_p0 = scmp.lt.s32.totalorder %s2170_s11, %s1785_s26 }
 0x56a   : > { %p1781_p11 = scmp.ne.s32.totalorder %s2170_s11, %s1780_s27  ;;  %p1788_p1 = scmp.lt.s32.totalorder %s1786_s28, %s1780_s27 }
 0x56c   : > { %p1782_p12 = pnand %p1781_p11, %p1949_p5  ;;  %p1789_p2 = por %p1788_p1, %p1787_p0 }
 0x56e   : > { %p1783_p13 = pneg %p1782_p12 }
 0x570   : > { %p1790_p3 = pnand %p1789_p2, %p1783_p13 }
 0x58b   : > { %v1050_v38 = vpop.f32.mrb[4].mxu0 }
 0x58c   : > { %1135 = vrot.lane.b32.xlu0 %v1050_v38, %s1853_s20  ;;  %v1607_v39 = vpop.f32.mrb[5].mxu0  ;;  %s2168_s20 = scalar_lea.hbm %s2221_s10, %s1511_s29 }
 0x599   : > { %v1126_v40 = vpop.f32.mrb[10].mxu1 }
 0x59a   : > { %1139 = vrot.lane.b32.xlu1 %v1126_v40, %s1854_s21  ;;  %v1612_v41 = vpop.f32.mrb[11].mxu1  ;;  %s1412_s21 = scalar_lea.sflag [#allocation3], %s348_s25 }
 0x5d7   : > { %v1132_v42 = vpop.permute.xlu1 %1131 }
 0x5d8   : > { %v1142_v46 = vsel %vm467_vm2, %v898_v28, %v1132_v42 }
 0x5fe   : > { %v1136_v45 = vpop.permute.xlu0 %1135 }
 0x5ff   : > { %v1144_v48 = vsel %vm1143_vm3, %v1142_v46, %v1136_v45 }
 0x60c   : > { %v1140_v49 = vpop.permute.xlu1 %1139 }
 0x60d   : > { %v1146_v50 = vsel %vm1145_vm4, %v1144_v48, %v1140_v49 }
 0x60e   : > { %1622 = vmatmul.mubr.msk.f32.vlgmr.msra.gmra.mrb[12].mxu1 %vm357_vm0, %v1146_v50 }
 0x60f   : > { %1684 = vmatpush3.bf16.msra.mxu1 %v1683_v47  ;;  %1632 = vmatprep.mubr.msk.f32.mxu1 %vm1845_vm1, %v1846_v9  ;;  %v1317_v9 = vld [vmem:[%s2219_s8 + $0x8] sm:$0xff] }
 0x610   : > { %1685 = vmatprep.subr.bf16.mxu1 %v1844_v6  ;;  %v1689_v56 = vpack.c.bf16 %v1317_v9, %v1316_v54 }
 0x612   : > { %1690 = vmatpush3.bf16.msra.mxu0 %v1689_v56 }
 0x613   : > { %1687 = vmatpush3.bf16.msra.mxu1 %v1686_v53  ;;  %1691 = vmatprep.subr.bf16.mxu0 %v1844_v6 }
 0x616   : > { %1693 = vmatpush3.bf16.msra.mxu0 %v1692_v58 }
 0x617   : > { %1694 = vmatprep.subr.bf16.mxu0 %v1844_v6 }
 0x61a   : > { %1696 = vmatpush3.bf16.msra.mxu0 %v1695_v61 }
 0x61b   : > { %1697 = vmatprep.subr.bf16.mxu0 %v1844_v6 }
 0x61e   : > { %1699 = vmatpush3.bf16.msra.mxu0 %v1698_v1 }
 0x61f   : > { %1700 = vmatprep.subr.bf16.mxu0 %v1844_v6 }
 0x622   : > { %1702 = vmatpush3.bf16.msra.mxu0 %v1701_v4 }
 0x623   : > { %1703 = vmatprep.subr.bf16.mxu0 %v1844_v6 }
 0x626   : > { %1705 = vmatpush3.bf16.msra.mxu0 %v1704_v8 }
 0x627   : > { %1706 = vmatprep.subr.bf16.mxu0 %v1844_v6 }
 0x62a   : > { %1708 = vmatpush3.bf16.msra.mxu0 %v1707_v12 }
 0x62b   : > { %1709 = vmatprep.subr.bf16.mxu0 %v1844_v6  ;;  %v1331_v6 = vld [vmem:[%s2219_s8 + $0x78] sm:$0xff] }
 0x62c   : > { %v1710_v19 = vpack.c.bf16 %v1331_v6, %v1330_v18 }
 0x62e   : > { %1711 = vmatpush3.bf16.msra.mxu0 %v1710_v19 }
 0x6e1   : > { %v1227_v14 = vpop.f32.mrb[12].mxu1 }
 0x6e2   : > { %v1228_v15 = vadd.f32 %v1505_v13, %v1227_v14  ;;  %v1623_v16 = vpop.f32.mrb[13].mxu1 }
 0x6e4   : > { %v1231_v17 = vadd.f32 %v1228_v15, %v1964_v0  ;;  %v1509_v0 = vld [vmem:[%s2220_s9] ss:$0 sm:$0xff] }
 0x6e6   : > { %1633 = vmatmul.mubr.msk.f32.vlgmr.msra.gmra.mrb[14].mxu1 %vm357_vm0, %v1231_v17 }
 0x7b9   : > { %v1312_v21 = vpop.f32.mrb[14].mxu1 }
 0x7ba   : > { %v1313_v22 = vadd.f32 %v1507_v20, %v1312_v21  ;;  %v1634_v23 = vpop.f32.mrb[15].mxu1 }
 0x7bc   : > { %1668 = vmatmul.mubr.f32.vlgmr.msra.gmra.mrb[6].mxu0 %v1313_v22 }
 0x88f   : > { %v1405_v24 = vpop.f32.mrb[6].mxu0 }
 0x890   : > { %v1406_v25 = vadd.f32 %v1509_v0, %v1405_v24  ;;  %v1669_v26 = vpop.f32.mrb[7].mxu0 }
 0x892   : > { %v1409_v27 = vadd.f32 %v1406_v25, %v1231_v17 }
 0x894   : > { %1410 = vst.msk [vmem:[%s350_s30] sm:$0xff] %vm357_vm0, %v1409_v27 }
 0x895   : > { %1793 = shalt.err (!%p1790_p3)
}
 0x896   : > { %s1794_s25 = scalar_lea.hbm %s2168_s20, 128  ;;  %s1798_s12 = scalar_lea.hbm %s2221_s10, 256 }
 0x897   : > { %p1795_p4 = scmp.ne.s32.totalorder %s2168_s20, %s1794_s25  ;;  %p1799_p9 = scmp.lt.u32.totalorder %s2168_s20, %s2221_s10 }
 0x898   : > { %p1800_p10 = scmp.lt.u32.totalorder %s1798_s12, %s1794_s25  ;;  %p1802_p12 = scmp.lt.u32.totalorder %s1794_s25, %s2168_s20 }
 0x899   : > { %p1796_p7 = pnand %p1795_p4, %p1949_p5 }
 0x89a   : > { %p1801_p11 = por %p1800_p10, %p1799_p9 }
 0x89b   : > { %p1797_p8 = pneg %p1796_p7 }
 0x89c   : > { %p1803_p13 = por %p1802_p12, %p1801_p11 }
 0x89e   : > { %p1804_p0 = pnand %p1803_p13, %p1797_p8 }
 0x8a0   : > { %1807 = shalt.err (!%p1804_p0)
}
 0x8a1   : > { %1712 = dma.vmem_to_hbm [thread:$0]  (%p1949_p5), %s2170_s11, 128, %s2168_s20, %s1412_s21  }
 0x8a2 PF: > { %p1718_p1 = scmp.ge.s32.totalorder %s1842_s16, 2  ;;  %s1437_s27 = sand.u32 1, %s1830_s13  }
 0x8a3   : > { %s1438_s26 = scalar_lea.sflag [#allocation3], %s1437_s27 }
 0x8a4   : > { %p1715_p2 = pnand %p1718_p1, %p1953_p6 }
 0x8a6   : > { %1825 = dma.done.wait (!%p1715_p2), %s1438_s26, 128  }
 0x8a7   : > { %1827 = vsyncadd (!%p1715_p2), %s1438_s26, 4294967168  ;;  %p20_p3 = scmp.ge.s32.totalorder %s1936_s19, 4   ;;  %s2224_s13 = smov %s1834_s14 }
 0x8a8   : > { %s2225_s14 = smov %s1838_s15  ;;  %s2226_s15 = smov %s1947_s22 }
 0x8a9   : > { %s2227_s16 = smov %s1936_s19  ;;  %22 = sbr.rel (!%p20_p3) target bundleno = 3 (0x3), region = 95 }
 0x8b0   :  { %1443 = vsyncpa [#allocation3], 1 }
 0x8b1   :  { %1445 = vsyncpa [#allocation3 + $0x1], 1 }

</bundles_post_ra>
